<compile_context>
chip_gen: v7x
topology: tpu7x:2x2x1
jax: 0.10.0
libtpu: 0.0.40
codegen_flags: <defaults>
</compile_context>

<pallas_src>
import functools

import jax
import jax.numpy as jnp
from jax.experimental import pallas as pl
from jax.experimental.pallas import tpu as pltpu


def _bottleneck_kernel(x_ref, w1_ref, w2_ref, w3_ref,
                       s1_ref, b1_ref, s2_ref, b2_ref, s3_ref, b3_ref,
                       m_ref, o_ref, *, width):
    # x_ref : (bt, Cin, HW)   f32, channel-major, HW lane-dense
    # w1_ref: (P, Cin)        bf16   conv1 1x1 (transposed)
    # w2_ref: (P, 9*P)        bf16   conv2 3x3 im2col-flattened (transposed)
    # w3_ref: (Cout, P)       bf16   conv3 1x1 (transposed)
    # s*/b* : (C, 1)          f32    folded BatchNorm scale / bias
    # m_ref : (9, HW)         f32    border-validity masks for the 3x3 taps
    # o_ref : (bt, Cout, HW)  f32
    bt = x_ref.shape[0]
    HW = x_ref.shape[2]

    for b in range(bt):
        xT = x_ref[b]                                              # (Cin, HW) f32

        # ---- conv1 (1x1) + bn1 + relu1 : bf16 MXU, f32 accumulate ----
        h1 = jnp.dot(w1_ref[...], xT.astype(jnp.bfloat16),
                     preferred_element_type=jnp.float32)           # (P, HW)
        h1 = jnp.maximum(h1 * s1_ref[...] + b1_ref[...], 0.0)

        # ---- conv2 (3x3, pad=1, stride=1) as a single im2col matmul ----
        # tap (dh,dw): shift the flattened HW axis by dh*W+dw (lane roll, XLU)
        # and zero the out-of-image positions with the precomputed mask.
        taps = []
        t = 0
        for dh in (-1, 0, 1):
            for dw in (-1, 0, 1):
                off = dh * width + dw
                shift = (-off) % HW
                rolled = pltpu.roll(h1, shift=shift, axis=1) if shift else h1
                taps.append(rolled * m_ref[t:t + 1, :])
                t += 1
        patch = jnp.concatenate(taps, axis=0).astype(jnp.bfloat16)  # (9P, HW)
        h2 = jnp.dot(w2_ref[...], patch,
                     preferred_element_type=jnp.float32)            # (P, HW)
        h2 = jnp.maximum(h2 * s2_ref[...] + b2_ref[...], 0.0)

        # ---- conv3 (1x1) + bn3 ----
        h3 = jnp.dot(w3_ref[...], h2.astype(jnp.bfloat16),
                     preferred_element_type=jnp.float32)            # (Cout, HW)
        h3 = h3 * s3_ref[...] + b3_ref[...]

        # ---- identity residual (downsample=None, se=False) + relu3 ----
        o_ref[b] = jnp.maximum(h3 + xT, 0.0)


def bottleneck_forward(x_nchw, params, *, batch_tile=1):
    """x_nchw: (N, Cin, H, W) float32; returns (N, Cout, H, W) float32."""
    w1, w2, w3, s1, b1, s2, b2, s3, b3 = params
    N, Cin, H, W = x_nchw.shape
    P = w1.shape[1]
    Cout = w3.shape[1]
    HW = H * W
    # Identity residual is only valid when inplanes == planes*expansion.
    assert Cin == Cout, "identity residual requires inplanes == planes*expansion"
    assert N % batch_tile == 0

    # Channel-major, lane-dense input slab: NCHW -> (N, Cin, H*W) is free.
    x = x_nchw.reshape(N, Cin, HW).astype(jnp.float32)

    # Transposed weights, bf16 for the MXU (accumulation stays f32 in-kernel).
    w1t = jnp.transpose(w1).astype(jnp.bfloat16)                           # (P, Cin)
    w2t = jnp.transpose(w2, (3, 0, 1, 2)).reshape(
        w2.shape[3], 9 * w2.shape[2]).astype(jnp.bfloat16)                 # (P, 9P)
    w3t = jnp.transpose(w3).astype(jnp.bfloat16)                           # (Cout, P)

    # Folded BN scale/bias as per-row (per-channel) columns.
    s1c, b1c = s1.reshape(P, 1), b1.reshape(P, 1)
    s2c, b2c = s2.reshape(P, 1), b2.reshape(P, 1)
    s3c, b3c = s3.reshape(Cout, 1), b3.reshape(Cout, 1)

    # Border-validity masks for the 9 taps of the 3x3 conv (computed once).
    hh, ww = jnp.meshgrid(jnp.arange(H), jnp.arange(W), indexing="ij")
    hh = hh.reshape(1, HW)
    ww = ww.reshape(1, HW)
    masks = []
    for dh in (-1, 0, 1):
        for dw in (-1, 0, 1):
            masks.append((hh + dh >= 0) & (hh + dh < H) &
                         (ww + dw >= 0) & (ww + dw < W))
    mask9 = jnp.concatenate(masks, axis=0).astype(jnp.float32)             # (9, HW)

    flops = 2 * N * HW * (Cin * P + 9 * P * P + P * Cout)
    bytes_accessed = int(
        (x.size + N * Cout * HW + mask9.size) * 4
        + (s1c.size + b1c.size + s2c.size + b2c.size + s3c.size + b3c.size) * 4
        + (w1t.size + w2t.size + w3t.size) * 2)

    kernel_fn = functools.partial(_bottleneck_kernel, width=W)

    out = pl.pallas_call(
        kernel_fn,
        out_shape=jax.ShapeDtypeStruct((N, Cout, HW), jnp.float32),
        grid_spec=pltpu.PrefetchScalarGridSpec(
            num_scalar_prefetch=0,
            grid=(N // batch_tile,),
            in_specs=[
                pl.BlockSpec((batch_tile, Cin, HW), lambda i: (i, 0, 0)),
                pl.BlockSpec(w1t.shape, lambda i: (0, 0)),
                pl.BlockSpec(w2t.shape, lambda i: (0, 0)),
                pl.BlockSpec(w3t.shape, lambda i: (0, 0)),
                pl.BlockSpec(s1c.shape, lambda i: (0, 0)),
                pl.BlockSpec(b1c.shape, lambda i: (0, 0)),
                pl.BlockSpec(s2c.shape, lambda i: (0, 0)),
                pl.BlockSpec(b2c.shape, lambda i: (0, 0)),
                pl.BlockSpec(s3c.shape, lambda i: (0, 0)),
                pl.BlockSpec(b3c.shape, lambda i: (0, 0)),
                pl.BlockSpec(mask9.shape, lambda i: (0, 0)),
            ],
            out_specs=pl.BlockSpec((batch_tile, Cout, HW), lambda i: (i, 0, 0)),
        ),
        compiler_params=pltpu.CompilerParams(
            dimension_semantics=("parallel",)),   # v7x: 2 TCs split the batch
        cost_estimate=pl.CostEstimate(
            flops=flops, transcendentals=0, bytes_accessed=bytes_accessed),
    )(x, w1t, w2t, w3t, s1c, b1c, s2c, b2c, s3c, b3c, mask9)

    # (N, Cout, H*W) -> NCHW is a free metadata reshape.
    return out.reshape(N, Cout, H, W)


def _fold_bn(kg, kb, km, kv, c, eps=1e-5):
    gamma = 1.0 + 0.1 * jax.random.normal(kg, (c,), jnp.float32)
    beta = 0.1 * jax.random.normal(kb, (c,), jnp.float32)
    mean = 0.1 * jax.random.normal(km, (c,), jnp.float32)
    var = jnp.abs(jax.random.normal(kv, (c,), jnp.float32)) + 0.5
    scale = gamma / jnp.sqrt(var + eps)
    bias = beta - mean * scale
    return scale.reshape(1, c), bias.reshape(1, c)


def init_params(key, inplanes, planes, expansion):
    # conv weights are bias-free (ResNet builder); BN folded to scale/bias.
    # TODO(synk): training-mode BatchNorm (batch statistics) not reproduced;
    # inference (running-stat) semantics are used.
    ks = jax.random.split(key, 15)
    P, Cexp = planes, planes * expansion
    w1 = 0.1 * jax.random.normal(ks[0], (inplanes, P), jnp.float32)
    w2 = 0.1 * jax.random.normal(ks[1], (3, 3, P, P), jnp.float32)
    w3 = 0.1 * jax.random.normal(ks[2], (P, Cexp), jnp.float32)
    s1, b1 = _fold_bn(ks[3], ks[4], ks[5], ks[6], P)
    s2, b2 = _fold_bn(ks[7], ks[8], ks[9], ks[10], P)
    s3, b3 = _fold_bn(ks[11], ks[12], ks[13], ks[14], Cexp)
    return (w1, w2, w3, s1, b1, s2, b2, s3, b3)


def reference_forward(x_nchw, params):
    """Pure-JAX reference with the same bf16-matmul / f32-accumulate math."""
    w1, w2, w3, s1, b1, s2, b2, s3, b3 = params
    dn = ('NHWC', 'HWIO', 'NHWC')
    bf = jnp.bfloat16
    x = jnp.transpose(x_nchw, (0, 2, 3, 1)).astype(jnp.float32)
    y = jax.lax.conv_general_dilated(x.astype(bf), w1[None, None].astype(bf),
                                     (1, 1), 'VALID', dimension_numbers=dn,
                                     preferred_element_type=jnp.float32)
    y = jnp.maximum(y * s1.reshape(1, 1, 1, -1) + b1.reshape(1, 1, 1, -1), 0.0)
    y = jax.lax.conv_general_dilated(y.astype(bf), w2.astype(bf),
                                     (1, 1), 'SAME', dimension_numbers=dn,
                                     preferred_element_type=jnp.float32)
    y = jnp.maximum(y * s2.reshape(1, 1, 1, -1) + b2.reshape(1, 1, 1, -1), 0.0)
    y = jax.lax.conv_general_dilated(y.astype(bf), w3[None, None].astype(bf),
                                     (1, 1), 'VALID', dimension_numbers=dn,
                                     preferred_element_type=jnp.float32)
    y = y * s3.reshape(1, 1, 1, -1) + b3.reshape(1, 1, 1, -1)
    y = jnp.maximum(y + x, 0.0)
    return jnp.transpose(y, (0, 3, 1, 2))


if __name__ == "__main__":
    key = jax.random.PRNGKey(0)
    kx, kp = jax.random.split(key)

    # Small shapes: batch=2, inplanes=32, planes=8, expansion=4 -> Cout=32
    # (identity residual, downsample=None).  H*W = 256 keeps lanes dense.
    N, inplanes, H, W = 2, 32, 16, 16
    planes, expansion = 8, 4

    x = jax.random.normal(kx, (N, inplanes, H, W), jnp.float32)
    params = init_params(kp, inplanes, planes, expansion)

    out = bottleneck_forward(x, params)
    out = jax.block_until_ready(out)

    ref = reference_forward(x, params)
    assert out.shape == (N, planes * expansion, H, W), out.shape
    max_err = float(jnp.max(jnp.abs(out - ref)))
    assert max_err < 2e-3, f"mismatch vs reference: {max_err}"

    print("KERNEL_OK")
</pallas_src>

<mosaic_0001>
module attributes {stable_mosaic.version = 11 : i64} {
  func.func @_bottleneck_kernel(%arg0: i32, %arg1: memref<1x32x256xf32, #tpu.memory_space<vmem>>, %arg2: memref<8x32xbf16, #tpu.memory_space<vmem>>, %arg3: memref<8x72xbf16, #tpu.memory_space<vmem>>, %arg4: memref<32x8xbf16, #tpu.memory_space<vmem>>, %arg5: memref<8x1xf32, #tpu.memory_space<vmem>>, %arg6: memref<8x1xf32, #tpu.memory_space<vmem>>, %arg7: memref<8x1xf32, #tpu.memory_space<vmem>>, %arg8: memref<8x1xf32, #tpu.memory_space<vmem>>, %arg9: memref<32x1xf32, #tpu.memory_space<vmem>>, %arg10: memref<32x1xf32, #tpu.memory_space<vmem>>, %arg11: memref<9x256xf32, #tpu.memory_space<vmem>>, %arg12: memref<1x32x256xf32, #tpu.memory_space<vmem>>) attributes {dimension_semantics = [#tpu.dimension_semantics<parallel>], iteration_bounds = array<i64: 2>, scalar_prefetch = 0 : i64, scratch_operands = 0 : i64, tpu.core_type = #tpu.core_type<tc>, window_params = [{transform_indices = @transform_0, window_bounds = array<i64: 1, 32, 256>}, {pipeline_mode = #tpu.pipeline_mode<synchronous>, transform_indices = @transform_1, window_bounds = array<i64: 8, 32>}, {pipeline_mode = #tpu.pipeline_mode<synchronous>, transform_indices = @transform_2, window_bounds = array<i64: 8, 72>}, {pipeline_mode = #tpu.pipeline_mode<synchronous>, transform_indices = @transform_3, window_bounds = array<i64: 32, 8>}, {pipeline_mode = #tpu.pipeline_mode<synchronous>, transform_indices = @transform_4, window_bounds = array<i64: 8, 1>}, {pipeline_mode = #tpu.pipeline_mode<synchronous>, transform_indices = @transform_5, window_bounds = array<i64: 8, 1>}, {pipeline_mode = #tpu.pipeline_mode<synchronous>, transform_indices = @transform_6, window_bounds = array<i64: 8, 1>}, {pipeline_mode = #tpu.pipeline_mode<synchronous>, transform_indices = @transform_7, window_bounds = array<i64: 8, 1>}, {pipeline_mode = #tpu.pipeline_mode<synchronous>, transform_indices = @transform_8, window_bounds = array<i64: 32, 1>}, {pipeline_mode = #tpu.pipeline_mode<synchronous>, transform_indices = @transform_9, window_bounds = array<i64: 32, 1>}, {pipeline_mode = #tpu.pipeline_mode<synchronous>, transform_indices = @transform_10, window_bounds = array<i64: 9, 256>}, {transform_indices = @transform_11, window_bounds = array<i64: 1, 32, 256>}]} {
    %c0 = arith.constant 0 : index
    %c0_0 = arith.constant 0 : index
    %c0_1 = arith.constant 0 : index
    %0 = vector.load %arg1[%c0, %c0_0, %c0_1] : memref<1x32x256xf32, #tpu.memory_space<vmem>>, vector<1x32x256xf32>
    %1 = vector.shape_cast %0 : vector<1x32x256xf32> to vector<32x256xf32>
    %c0_2 = arith.constant 0 : index
    %c0_3 = arith.constant 0 : index
    %2 = vector.load %arg2[%c0_2, %c0_3] : memref<8x32xbf16, #tpu.memory_space<vmem>>, vector<8x32xbf16>
    %3 = arith.truncf %1 : vector<32x256xf32> to vector<32x256xbf16>
    %cst = arith.constant dense<0.000000e+00> : vector<8x256xf32>
    %4 = tpu.matmul %2, %3, %cst {dimension_numbers = #tpu.dot_dimension_numbers<[1], [0], [0], [1], [0, 0, 1, 1], [], []>} : vector<8x32xbf16>, vector<32x256xbf16>, vector<8x256xf32> -> vector<8x256xf32>
    %c0_4 = arith.constant 0 : index
    %c0_5 = arith.constant 0 : index
    %5 = vector.load %arg5[%c0_4, %c0_5] : memref<8x1xf32, #tpu.memory_space<vmem>>, vector<8x1xf32>
    %6 = vector.broadcast %5 : vector<8x1xf32> to vector<8x256xf32>
    %7 = arith.mulf %4, %6 : vector<8x256xf32>
    %c0_6 = arith.constant 0 : index
    %c0_7 = arith.constant 0 : index
    %8 = vector.load %arg6[%c0_6, %c0_7] : memref<8x1xf32, #tpu.memory_space<vmem>>, vector<8x1xf32>
    %9 = vector.broadcast %8 : vector<8x1xf32> to vector<8x256xf32>
    %10 = arith.addf %7, %9 : vector<8x256xf32>
    %cst_8 = arith.constant 0.000000e+00 : f32
    %11 = vector.broadcast %cst_8 : f32 to vector<8x256xf32>
    %12 = arith.maximumf %10, %11 : vector<8x256xf32>
    %c17_i32 = arith.constant 17 : i32
    %13 = tpu.dynamic_rotate %12 by %c17_i32 dim 1 : vector<8x256xf32>, i32 -> vector<8x256xf32>
    %c0_9 = arith.constant 0 : index
    %c0_10 = arith.constant 0 : index
    %14 = vector.load %arg11[%c0_9, %c0_10] : memref<9x256xf32, #tpu.memory_space<vmem>>, vector<1x256xf32>
    %15 = vector.broadcast %14 : vector<1x256xf32> to vector<8x256xf32>
    %16 = arith.mulf %13, %15 : vector<8x256xf32>
    %c16_i32 = arith.constant 16 : i32
    %17 = tpu.dynamic_rotate %12 by %c16_i32 dim 1 : vector<8x256xf32>, i32 -> vector<8x256xf32>
    %c1 = arith.constant 1 : index
    %c0_11 = arith.constant 0 : index
    %18 = vector.load %arg11[%c1, %c0_11] : memref<9x256xf32, #tpu.memory_space<vmem>>, vector<1x256xf32>
    %19 = vector.broadcast %18 : vector<1x256xf32> to vector<8x256xf32>
    %20 = arith.mulf %17, %19 : vector<8x256xf32>
    %c15_i32 = arith.constant 15 : i32
    %21 = tpu.dynamic_rotate %12 by %c15_i32 dim 1 : vector<8x256xf32>, i32 -> vector<8x256xf32>
    %c2 = arith.constant 2 : index
    %c0_12 = arith.constant 0 : index
    %22 = vector.load %arg11[%c2, %c0_12] : memref<9x256xf32, #tpu.memory_space<vmem>>, vector<1x256xf32>
    %23 = vector.broadcast %22 : vector<1x256xf32> to vector<8x256xf32>
    %24 = arith.mulf %21, %23 : vector<8x256xf32>
    %c1_i32 = arith.constant 1 : i32
    %25 = tpu.dynamic_rotate %12 by %c1_i32 dim 1 : vector<8x256xf32>, i32 -> vector<8x256xf32>
    %c3 = arith.constant 3 : index
    %c0_13 = arith.constant 0 : index
    %26 = vector.load %arg11[%c3, %c0_13] : memref<9x256xf32, #tpu.memory_space<vmem>>, vector<1x256xf32>
    %27 = vector.broadcast %26 : vector<1x256xf32> to vector<8x256xf32>
    %28 = arith.mulf %25, %27 : vector<8x256xf32>
    %c4 = arith.constant 4 : index
    %c0_14 = arith.constant 0 : index
    %29 = vector.load %arg11[%c4, %c0_14] : memref<9x256xf32, #tpu.memory_space<vmem>>, vector<1x256xf32>
    %30 = vector.broadcast %29 : vector<1x256xf32> to vector<8x256xf32>
    %31 = arith.mulf %12, %30 : vector<8x256xf32>
    %c255_i32 = arith.constant 255 : i32
    %32 = tpu.dynamic_rotate %12 by %c255_i32 dim 1 : vector<8x256xf32>, i32 -> vector<8x256xf32>
    %c5 = arith.constant 5 : index
    %c0_15 = arith.constant 0 : index
    %33 = vector.load %arg11[%c5, %c0_15] : memref<9x256xf32, #tpu.memory_space<vmem>>, vector<1x256xf32>
    %34 = vector.broadcast %33 : vector<1x256xf32> to vector<8x256xf32>
    %35 = arith.mulf %32, %34 : vector<8x256xf32>
    %c241_i32 = arith.constant 241 : i32
    %36 = tpu.dynamic_rotate %12 by %c241_i32 dim 1 : vector<8x256xf32>, i32 -> vector<8x256xf32>
    %c6 = arith.constant 6 : index
    %c0_16 = arith.constant 0 : index
    %37 = vector.load %arg11[%c6, %c0_16] : memref<9x256xf32, #tpu.memory_space<vmem>>, vector<1x256xf32>
    %38 = vector.broadcast %37 : vector<1x256xf32> to vector<8x256xf32>
    %39 = arith.mulf %36, %38 : vector<8x256xf32>
    %c240_i32 = arith.constant 240 : i32
    %40 = tpu.dynamic_rotate %12 by %c240_i32 dim 1 : vector<8x256xf32>, i32 -> vector<8x256xf32>
    %c7 = arith.constant 7 : index
    %c0_17 = arith.constant 0 : index
    %41 = vector.load %arg11[%c7, %c0_17] : memref<9x256xf32, #tpu.memory_space<vmem>>, vector<1x256xf32>
    %42 = vector.broadcast %41 : vector<1x256xf32> to vector<8x256xf32>
    %43 = arith.mulf %40, %42 : vector<8x256xf32>
    %c239_i32 = arith.constant 239 : i32
    %44 = tpu.dynamic_rotate %12 by %c239_i32 dim 1 : vector<8x256xf32>, i32 -> vector<8x256xf32>
    %c8 = arith.constant 8 : index
    %c0_18 = arith.constant 0 : index
    %45 = vector.load %arg11[%c8, %c0_18] : memref<9x256xf32, #tpu.memory_space<vmem>>, vector<1x256xf32>
    %46 = vector.broadcast %45 : vector<1x256xf32> to vector<8x256xf32>
    %47 = arith.mulf %44, %46 : vector<8x256xf32>
    %48 = tpu.concatenate %16, %20, %24, %28, %31, %35, %39, %43, %47 in 0 : vector<8x256xf32>, vector<8x256xf32>, vector<8x256xf32>, vector<8x256xf32>, vector<8x256xf32>, vector<8x256xf32>, vector<8x256xf32>, vector<8x256xf32>, vector<8x256xf32> -> vector<72x256xf32>
    %49 = arith.truncf %48 : vector<72x256xf32> to vector<72x256xbf16>
    %c0_19 = arith.constant 0 : index
    %c0_20 = arith.constant 0 : index
    %50 = vector.load %arg3[%c0_19, %c0_20] : memref<8x72xbf16, #tpu.memory_space<vmem>>, vector<8x72xbf16>
    %cst_21 = arith.constant dense<0.000000e+00> : vector<8x256xf32>
    %51 = tpu.matmul %50, %49, %cst_21 {dimension_numbers = #tpu.dot_dimension_numbers<[1], [0], [0], [1], [0, 0, 1, 1], [], []>} : vector<8x72xbf16>, vector<72x256xbf16>, vector<8x256xf32> -> vector<8x256xf32>
    %c0_22 = arith.constant 0 : index
    %c0_23 = arith.constant 0 : index
    %52 = vector.load %arg7[%c0_22, %c0_23] : memref<8x1xf32, #tpu.memory_space<vmem>>, vector<8x1xf32>
    %53 = vector.broadcast %52 : vector<8x1xf32> to vector<8x256xf32>
    %54 = arith.mulf %51, %53 : vector<8x256xf32>
    %c0_24 = arith.constant 0 : index
    %c0_25 = arith.constant 0 : index
    %55 = vector.load %arg8[%c0_24, %c0_25] : memref<8x1xf32, #tpu.memory_space<vmem>>, vector<8x1xf32>
    %56 = vector.broadcast %55 : vector<8x1xf32> to vector<8x256xf32>
    %57 = arith.addf %54, %56 : vector<8x256xf32>
    %cst_26 = arith.constant 0.000000e+00 : f32
    %58 = vector.broadcast %cst_26 : f32 to vector<8x256xf32>
    %59 = arith.maximumf %57, %58 : vector<8x256xf32>
    %c0_27 = arith.constant 0 : index
    %c0_28 = arith.constant 0 : index
    %60 = vector.load %arg4[%c0_27, %c0_28] : memref<32x8xbf16, #tpu.memory_space<vmem>>, vector<32x8xbf16>
    %61 = arith.truncf %59 : vector<8x256xf32> to vector<8x256xbf16>
    %cst_29 = arith.constant dense<0.000000e+00> : vector<32x256xf32>
    %62 = tpu.matmul %60, %61, %cst_29 {dimension_numbers = #tpu.dot_dimension_numbers<[1], [0], [0], [1], [0, 0, 1, 1], [], []>} : vector<32x8xbf16>, vector<8x256xbf16>, vector<32x256xf32> -> vector<32x256xf32>
    %c0_30 = arith.constant 0 : index
    %c0_31 = arith.constant 0 : index
    %63 = vector.load %arg9[%c0_30, %c0_31] : memref<32x1xf32, #tpu.memory_space<vmem>>, vector<32x1xf32>
    %64 = vector.broadcast %63 : vector<32x1xf32> to vector<32x256xf32>
    %65 = arith.mulf %62, %64 : vector<32x256xf32>
    %c0_32 = arith.constant 0 : index
    %c0_33 = arith.constant 0 : index
    %66 = vector.load %arg10[%c0_32, %c0_33] : memref<32x1xf32, #tpu.memory_space<vmem>>, vector<32x1xf32>
    %67 = vector.broadcast %66 : vector<32x1xf32> to vector<32x256xf32>
    %68 = arith.addf %65, %67 : vector<32x256xf32>
    %69 = arith.addf %68, %1 : vector<32x256xf32>
    %cst_34 = arith.constant 0.000000e+00 : f32
    %70 = vector.broadcast %cst_34 : f32 to vector<32x256xf32>
    %71 = arith.maximumf %69, %70 : vector<32x256xf32>
    %c0_35 = arith.constant 0 : index
    %c0_36 = arith.constant 0 : index
    %c0_37 = arith.constant 0 : index
    %72 = vector.load %arg12[%c0_35, %c0_36, %c0_37] : memref<1x32x256xf32, #tpu.memory_space<vmem>>, vector<1x32x256xf32>
    %73 = vector.shape_cast %72 : vector<1x32x256xf32> to vector<32x256xf32>
    %74 = vector.shape_cast %71 : vector<32x256xf32> to vector<1x32x256xf32>
    tpu.vector_store %arg12[%c0_35, %c0_36, %c0_37], %74 {strides = array<i32>} : memref<1x32x256xf32, #tpu.memory_space<vmem>>, vector<1x32x256xf32>,
    return
  }
  func.func @transform_0(%arg0: i32) -> (i32, i32, i32) {
    %c0_i32 = arith.constant 0 : i32
    %c0_i32_0 = arith.constant 0 : i32
    %c0_i32_1 = arith.constant 0 : i32
    return %arg0, %c0_i32, %c0_i32_0 : i32, i32, i32
  }
  func.func @transform_1(%arg0: i32) -> (i32, i32) {
    %c0_i32 = arith.constant 0 : i32
    %c0_i32_0 = arith.constant 0 : i32
    %c0_i32_1 = arith.constant 0 : i32
    return %c0_i32, %c0_i32_0 : i32, i32
  }
  func.func @transform_2(%arg0: i32) -> (i32, i32) {
    %c0_i32 = arith.constant 0 : i32
    %c0_i32_0 = arith.constant 0 : i32
    %c0_i32_1 = arith.constant 0 : i32
    return %c0_i32, %c0_i32_0 : i32, i32
  }
  func.func @transform_3(%arg0: i32) -> (i32, i32) {
    %c0_i32 = arith.constant 0 : i32
    %c0_i32_0 = arith.constant 0 : i32
    %c0_i32_1 = arith.constant 0 : i32
    return %c0_i32, %c0_i32_0 : i32, i32
  }
  func.func @transform_4(%arg0: i32) -> (i32, i32) {
    %c0_i32 = arith.constant 0 : i32
    %c0_i32_0 = arith.constant 0 : i32
    %c0_i32_1 = arith.constant 0 : i32
    return %c0_i32, %c0_i32_0 : i32, i32
  }
  func.func @transform_5(%arg0: i32) -> (i32, i32) {
    %c0_i32 = arith.constant 0 : i32
    %c0_i32_0 = arith.constant 0 : i32
    %c0_i32_1 = arith.constant 0 : i32
    return %c0_i32, %c0_i32_0 : i32, i32
  }
  func.func @transform_6(%arg0: i32) -> (i32, i32) {
    %c0_i32 = arith.constant 0 : i32
    %c0_i32_0 = arith.constant 0 : i32
    %c0_i32_1 = arith.constant 0 : i32
    return %c0_i32, %c0_i32_0 : i32, i32
  }
  func.func @transform_7(%arg0: i32) -> (i32, i32) {
    %c0_i32 = arith.constant 0 : i32
    %c0_i32_0 = arith.constant 0 : i32
    %c0_i32_1 = arith.constant 0 : i32
    return %c0_i32, %c0_i32_0 : i32, i32
  }
  func.func @transform_8(%arg0: i32) -> (i32, i32) {
    %c0_i32 = arith.constant 0 : i32
    %c0_i32_0 = arith.constant 0 : i32
    %c0_i32_1 = arith.constant 0 : i32
    return %c0_i32, %c0_i32_0 : i32, i32
  }
  func.func @transform_9(%arg0: i32) -> (i32, i32) {
    %c0_i32 = arith.constant 0 : i32
    %c0_i32_0 = arith.constant 0 : i32
    %c0_i32_1 = arith.constant 0 : i32
    return %c0_i32, %c0_i32_0 : i32, i32
  }
  func.func @transform_10(%arg0: i32) -> (i32, i32) {
    %c0_i32 = arith.constant 0 : i32
    %c0_i32_0 = arith.constant 0 : i32
    %c0_i32_1 = arith.constant 0 : i32
    return %c0_i32, %c0_i32_0 : i32, i32
  }
  func.func @transform_11(%arg0: i32) -> (i32, i32, i32) {
    %c0_i32 = arith.constant 0 : i32
    %c0_i32_0 = arith.constant 0 : i32
    %c0_i32_1 = arith.constant 0 : i32
    return %arg0, %c0_i32, %c0_i32_0 : i32, i32, i32
  }
}

</mosaic_0001>

<bundles_post_ra>
// kernel: tpu_custom_call.1
= control target key start
LH: loop header
LB: loop body
LE: loop exit
PB: predicated region body
PF: predicated region fallthrough
CT: control target
= control target key end

     0   :  { %16 = vsyncpa [#allocation3], 0  ;;  %s1633_s0 = inlined_call_operand.hbm [shape: f32[2,32,256], index: 0, kind: input, shape index: {}]   ;;  %s1634_s1 = inlined_call_operand.vmem [shape: bf16[8,32], index: 1, kind: input, shape index: {}]   ;;  %s1635_s2 = inlined_call_operand.vmem [shape: bf16[8,72], index: 2, kind: input, shape index: {}]   ;;  %s1636_s3 = inlined_call_operand.vmem [shape: bf16[32,8], index: 3, kind: input, shape index: {}]   ;;  %s1637_s4 = inlined_call_operand.vmem [shape: f32[8,1], index: 4, kind: input, shape index: {}]   ;;  %s1638_s5 = inlined_call_operand.vmem [shape: f32[8,1], index: 5, kind: input, shape index: {}]   ;;  %s1639_s6 = inlined_call_operand.vmem [shape: f32[8,1], index: 6, kind: input, shape index: {}]   ;;  %s1640_s7 = inlined_call_operand.vmem [shape: f32[8,1], index: 7, kind: input, shape index: {}]   ;;  %s1641_s8 = inlined_call_operand.vmem [shape: f32[32,1], index: 8, kind: input, shape index: {}]   ;;  %s1642_s9 = inlined_call_operand.vmem [shape: f32[32,1], index: 9, kind: input, shape index: {}]   ;;  %s1643_s10 = inlined_call_operand.vmem [shape: f32[9,256], index: 10, kind: input, shape index: {}]   ;;  %s1644_s11 = inlined_call_operand.hbm [shape: f32[2,32,256], index: 11, kind: output, shape index: {}]  }
   0x1   :  { %18 = vsyncpa [#allocation3 + $0x1], 0 }
   0x2   :  { %19 = vsyncpa [#allocation4], 0 }
   0x3   :  { %21 = vsyncpa [#allocation4 + $0x1], 0  ;;  %s1278_s17 = smov 0   ;;  %s1280_s18 = smov 0  }
   0x4   :  { %s1282_s19 = smov 0   ;;  %s1284_s20 = smov 0  }
   0x5 LB: > { %1648 = sst [smem:[#allocation8_spill]] %s1198_s19  ;;  %s1299_s21 = sadd.s32 4294967295, %s1202_s20   ;;  %s1202_s20 = sphi %s1284_s20, %s1663_s20   ;;  %s1198_s19 = sphi %s1282_s19, %s1660_s19   ;;  %s1194_s18 = sphi %s1280_s18, %s1662_s18   ;;  %s1190_s17 = sphi %s1278_s17, %s1661_s17  }
   0x6   : > { %s1012_s22 = sadd.s32 4294967294, %s1202_s20   ;;  %s1303_s23 = sadd.s32 1, %s1202_s20  }
   0x7   : > { %s34_s24 = sadd.s32 1, %s1198_s19  ;;  %s31_s25 = ssub.s32 %s1202_s20, %s1303_s23 }
   0x8   : > { %p41_p0 = scmp.ne.s32.totalorder %s1198_s19, %s1194_s18  ;;  %p32_p1 = scmp.eq.s32.totalorder %s31_s25, 0 }
   0x9   : > { %p42_p2 = scmp.eq.s32.totalorder %s1202_s20, 0  ;;  %p47_p3 = scmp.ne.s32.totalorder %s1194_s18, %s1190_s17 }
   0xa   : > { %p48_p4 = scmp.eq.s32.totalorder %s1299_s21, 0  ;;  %p281_p7 = scmp.eq.s32.totalorder %s1299_s21, 1 }
   0xb   : > { %s1315_s26 = scalar_select %p32_p1, %s1198_s19, %s34_s24  }
   0xc   : > { %p1317_p5 = por %p42_p2, %p41_p0  ;;  %p1321_p6 = por %p48_p4, %p47_p3 }
   0xd   : > { %1649 = sst [smem:[#allocation9_spill]] %s1315_s26  ;;  %p287_p8 = scmp.eq.s32.totalorder %s1012_s22, 1 }
   0xe   : > { %p1056_p10 = scmp.lt.s32.totalorder %s1202_s20, 2  ;;  %p1328_p11 = por %p281_p7, %p41_p0 }
   0xf   : > { %p1332_p12 = por %p287_p8, %p47_p3  ;;  %s337_s12 = sand.u32 1, %s1198_s19  }
  0x10   : > { %s1652_s29 = scalar_select %p1328_p11, 1, 0 }
  0x11   : > { %s1653_s30 = scalar_select %p1332_p12, 1, 0 }
  0x12   : > { %s1042_s13 = sshll.u32 %s1202_s20, 10  ;;  %s1015_s14 = sshll.u32 %s337_s12, 6 }
  0x13   : > { %s1341_s24 = scalar_lea.hbm %s1633_s0, %s1042_s13  ;;  %s341_s22 = scalar_lea.vmem [#allocation2], %s1015_s14 }
  0x14   : > { %s348_s25 = sshll.u32 %s341_s22, 4  ;;  %p1345_p13 = pnand %p1056_p10, %p1317_p5  ;;  %s1349_s25 = int_to_ptr.vmem [resolvable:$true] %s348_s25 }
  0x15   : > { %s1351_s19 = scalar_lea.sflag [#allocation3], %s337_s12  ;;  %s1106_s15 = scalar_lea.hbm %s1341_s24, 1024 }
  0x16   : > { %p1107_p0 = scmp.ne.s32.totalorder %s1341_s24, %s1106_s15  ;;  %p1108_p1 = pneg %p1345_p13 }
  0x17   : > { %s1111_s14 = scalar_lea.hbm %s1633_s0, 2048  ;;  %p1112_p4 = scmp.lt.u32.totalorder %s1341_s24, %s1633_s0 }
  0x18   : > { %p1109_p2 = pnand %p1108_p1, %p1107_p0  ;;  %p1113_p5 = scmp.lt.u32.totalorder %s1111_s14, %s1106_s15 }
  0x19   : > { %p1115_p8 = scmp.lt.u32.totalorder %s1106_s15, %s1341_s24 }
  0x1a   : > { %p1110_p3 = pneg %p1109_p2  ;;  %p1114_p7 = por %p1113_p5, %p1112_p4 }
  0x1c   : > { %p1116_p10 = por %p1115_p8, %p1114_p7 }
  0x1e   : > { %p1117_p9 = pnand %p1116_p10, %p1110_p3 }
  0x20   : > { %1120 = shalt.err (!%p1117_p9)
}
  0x21   : > { %s1121_s12 = scalar_lea.vmem %s1349_s25, 1024  ;;  %s1204_s13 = smov [#allocation2]  }
  0x22   : > { %p1122_p0 = scmp.ne.s32.totalorder %s1349_s25, %s1121_s12  ;;  %s1126_s27 = sshll.u32 %s1204_s13, 4  ;;  %s1127_s27 = int_to_ptr.vmem [resolvable:$false] %s1126_s27 }
  0x23   : > { %s1128_s16 = scalar_lea.vmem %s1127_s27, 2048  ;;  %p1129_p11 = scmp.lt.s32.totalorder %s1349_s25, %s1127_s27 }
  0x24   : > { %p1124_p2 = pnand %p1122_p0, %p1108_p1  ;;  %p1130_p4 = scmp.lt.s32.totalorder %s1128_s16, %s1121_s12 }
  0x26   : > { %p1125_p12 = pneg %p1124_p2  ;;  %p1131_p5 = por %p1130_p4, %p1129_p11 }
  0x28   : > { %p1132_p7 = pnand %p1131_p5, %p1125_p12 }
  0x2a   : > { %1135 = shalt.err (!%p1132_p7)
}
  0x2b   : > { %s1205_s15 = smov 256   ;;  %s1206_s14 = smov 16  }
  0x2c   : > { %1051 = dma.hbm_to_vmem [thread:$0]  (!%p1345_p13), %s1341_s24, 1024, %s1349_s25, %s1351_s19, %s1205_s15, %s1205_s15, %s1206_s14  }
  0x2d   : > { %p1018_p9 = scmp.ge.s32.totalorder %s1202_s20, 1  ;;  %p356_p1 = scmp.lt.s32.totalorder %s1202_s20, 3 }
  0x2f   : > { %p357_p3 = pnand %p1018_p9, %p356_p1 }
  0x30   : > { %s1382_s22 = sand.u32 (!%p357_p3), 1, %s1194_s18  }
  0x31   : > { %360 = sbr.rel (%p357_p3) target bundleno = 913 (0x391), region = 64  ;;  %s1019_s12 = sshll.u32 (!%p357_p3), %s1382_s22, 6 }
  0x32   : > { %s363_s13 = scalar_lea.sflag (!%p357_p3), [#allocation3], %s1382_s22  ;;  %s366_s27 = scalar_lea.vmem (!%p357_p3), [#allocation2], %s1019_s12 }
  0x38   : > { %1181 = dma.done.wait (%p1321_p6), %s363_s13, 1024  }
  0x39   : > { %1183 = vsyncadd (%p1321_p6), %s363_s13, 4294966272  ;;  %v1207_v0 = vmov 0   ;;  %v1396_v1 = vld [vmem:[%s366_s27 + $0x8] sm:$0xff]  ;;  %v1398_v2 = vld [vmem:[%s366_s27 + $0x18] sm:$0xff]  ;;  %vm419_vm0 = vcmask 261120   ;;  %s1647_s15 = smov 16   ;;  %v486_v38 = vlaneseq }
  0x3a   : > { %455 = vmatprep.mubr.bf16.mxu0 %v1207_v0  ;;  %1102 = vset.pattern.permute.xlu0 %v1207_v0  ;;  %v1400_v3 = vld [vmem:[%s366_s27] sm:$0xff]  ;;  %v416_v4 = vpack.c.bf16 %v1398_v2, %v1396_v1  ;;  %v1404_v5 = vld [vmem:[%s366_s27 + $0x10] sm:$0xff]  ;;  %v1406_v6 = vld [vmem:[%s366_s27 + $0x28] sm:$0xff]  ;;  %s1209_s14 = smov 17   ;;  %s1210_s13 = smov 15   ;;  %vm689_vm9 = vcmask 1043456  }
  0x3b   : > { %728 = vmatprep.mubr.bf16.mxu1 %v1207_v0  ;;  %1103 = vset.pattern.permute.xlu1 %v1207_v0  ;;  %v1408_v7 = vld [vmem:[%s366_s27 + $0x38] sm:$0xff]  ;;  %v415_v8 = vpack.c.bf16 %v1404_v5, %v1400_v3  ;;  %v1414_v10 = vld [vmem:[%s366_s27 + $0x20] sm:$0xff]  ;;  %v1416_v11 = vld [vmem:[%s366_s27 + $0x30] sm:$0xff]  ;;  %s1211_s27 = smov 1   ;;  %s1212_s19 = smov 127   ;;  %v494_v39 = vshrl.u32 %v486_v38, 7 }
  0x3c   : > { %v418_v9 = vpack.c.bf16 %v1408_v7, %v1406_v6  ;;  %423 = vmatprep.subr.bf16.mxu0 %v416_v4  ;;  %v464_v12 = vld [vmem:[%s1637_s4] sm:$0xff]  ;;  %v417_v13 = vpack.c.bf16 %v1416_v11, %v1414_v10  ;;  %s1213_s26 = smov 113   ;;  %s1214_s28 = smov 112   ;;  %v839_v30 = vld [vmem:[%s1641_s8 + $0x10] sm:$0xff]  ;;  %v838_v34 = vld [vmem:[%s1641_s8 + $0x8] sm:$0xff]  ;;  %v1482_v42 = vand.u32 127, %v486_v38 }
  0x3d   : > { %424 = vmatpush1.bf16.msra.mxu0 %v415_v8  ;;  %467 = vperm.xlu0 %1102, %v464_v12   ;;  %v472_v14 = vld [vmem:[%s1638_s5] sm:$0xff]  ;;  %s1215_s24 = smov 111   ;;  %v871_v32 = vld [vmem:[%s1642_s9 + $0x10] sm:$0xff]  ;;  %v840_v35 = vld [vmem:[%s1641_s8 + $0x18] sm:$0xff]  ;;  %v1487_v44 = vsub.s32 0, %v494_v39  ;;  %v1493_v47 = vsub.s32 1, %v494_v39 }
  0x3e   : > { %425 = vmatprep.subr.bf16.mxu0 %v418_v9  ;;  %v414_v15 = vld [vmem:[%s1634_s1] sm:$0xf]  ;;  %v870_v36 = vld [vmem:[%s1642_s9 + $0x8] sm:$0xff]  ;;  %v872_v37 = vld [vmem:[%s1642_s9 + $0x18] sm:$0xff]  ;;  %vm488_vm1 = vcmp.lt.s32.totalorder %v1482_v42, 17  ;;  %vm509_vm2 = vcmp.lt.s32.totalorder %v1482_v42, 16 }
  0x3f   : > { %v737_v28 = vld [vmem:[%s1639_s6] sm:$0xff]  ;;  %vm531_vm3 = vcmp.lt.s32.totalorder %v1482_v42, 15  ;;  %vm553_vm4 = vcmp.lt.s32.totalorder %v1482_v42, 1  ;;  %vm590_vm5 = vcmp.lt.s32.totalorder %v1482_v42, 127  ;;  %vm612_vm6 = vcmp.lt.s32.totalorder %v1482_v42, 113  ;;  %p1655_p11 = scmp.ne.s32.totalorder %s1652_s29, 0 }
  0x40   : > { %v837_v29 = vld [vmem:[%s1641_s8] sm:$0xff]  ;;  %vm634_vm7 = vcmp.lt.s32.totalorder %v1482_v42, 112  ;;  %vm656_vm8 = vcmp.lt.s32.totalorder %v1482_v42, 111  ;;  %vm685_vm10 = vcmask 588800   ;;  %vm771_vm11 = vcmask 64512  }
  0x41   : > { %426 = vmatpush1.bf16.msra.mxu0 %v417_v13  ;;  %475 = vperm.xlu0 %1102, %v472_v14   ;;  %v869_v31 = vld [vmem:[%s1642_s9] sm:$0xff] }
  0x42   : > { %v745_v33 = vld [vmem:[%s1640_s7] sm:$0xff] }
  0x43   : > { %v491_v43 = vld [vmem:[%s1643_s10] ss:$8 sm:$0x3]  ;;  %v1022_v45 = vld [vmem:[%s1643_s10 + $0x1] ss:$8 sm:$0x3] }
  0x44   : > { %1021 = vmatmul.mubr.msk.bf16.vlgmr.msra.gmra.mrb[0].mxu0 %vm419_vm0, %v414_v15  ;;  %v496_v49 = vrot.slane %v491_v43, %v1487_v44  ;;  %v518_v50 = vrot.slane %v1022_v45, %v1487_v44  ;;  %v500_v51 = vrot.slane %v491_v43, %v1493_v47  ;;  %v522_v52 = vrot.slane %v1022_v45, %v1493_v47  ;;  %v1023_v61 = vld [vmem:[%s1643_s10 + $0x2] ss:$8 sm:$0x3]  ;;  %v1024_v4 = vld [vmem:[%s1643_s10 + $0x3] ss:$8 sm:$0x3] }
  0x45   : > { %816 = vmatprep.mubr.bf16.mxu0 %v1207_v0  ;;  %v540_v13 = vrot.slane %v1023_v61, %v1487_v44  ;;  %v1025_v14 = vld [vmem:[%s1643_s10 + $0x4] ss:$8 sm:$0x3]  ;;  %v1027_v45 = vld [vmem:[%s1643_s10 + $0x6] ss:$8 sm:$0x3] }
  0xbc   : > { %v468_v16 = vpop.permute.xlu0 %467 }
  0xc0   : > { %v476_v20 = vpop.permute.xlu0 %475 }
 0x117   : > { %v457_v17 = vpop.f32.mrb[0].mxu0 }
 0x118   : > { %v470_v18 = vmul.f32 %v468_v16, %v457_v17  ;;  %v459_v19 = vpop.f32.mrb[1].mxu0  ;;  %v562_v17 = vrot.slane %v1024_v4, %v1487_v44 }
 0x119   : > { %v471_v21 = vmul.f32 %v468_v16, %v459_v19  ;;  %v461_v22 = vpop.f32.mrb[2].mxu0  ;;  %v544_v16 = vrot.slane %v1023_v61, %v1493_v47  ;;  %v1026_v19 = vld [vmem:[%s1643_s10 + $0x5] ss:$8 sm:$0x3] }
 0x11a   : > { %v478_v23 = vadd.f32 %v476_v20, %v470_v18  ;;  %v462_v24 = vpop.f32.mrb[3].mxu0  ;;  %v566_v18 = vrot.slane %v1024_v4, %v1493_v47 }
 0x11b   : > { %v479_v26 = vadd.f32 %v476_v20, %v471_v21  ;;  %v577_v24 = vrot.slane %v1025_v14, %v1487_v44 }
 0x11c   : > { %v1430_v25 = vmax.f32 %v478_v23, 0.0  ;;  %v581_v23 = vrot.slane %v1025_v14, %v1493_v47 }
 0x11d   : > { %v1435_v27 = vmax.f32 %v479_v26, 0.0 }
 0x11e   : > { %505 = vrot.lane.b32.xlu0 %v1430_v25, %s1647_s15  ;;  %482 = vrot.lane.b32.xlu1 %v1430_v25, %s1209_s14 }
 0x122   : > { %527 = vrot.lane.b32.xlu0 %v1430_v25, %s1210_s13  ;;  %484 = vrot.lane.b32.xlu1 %v1435_v27, %s1209_s14 }
 0x126   : > { %549 = vrot.lane.b32.xlu0 %v1430_v25, %s1211_s27  ;;  %507 = vrot.lane.b32.xlu1 %v1435_v27, %s1647_s15 }
 0x12a   : > { %586 = vrot.lane.b32.xlu0 %v1430_v25, %s1212_s19  ;;  %529 = vrot.lane.b32.xlu1 %v1435_v27, %s1210_s13 }
 0x12e   : > { %608 = vrot.lane.b32.xlu0 %v1430_v25, %s1213_s26  ;;  %551 = vrot.lane.b32.xlu1 %v1435_v27, %s1211_s27  ;;  %s1567_s27 = scalar_lea.vmem [#allocation5], %s1019_s12  ;;  %s1043_s12 = sshll.u32 %s1299_s21, 10 }
 0x12f   : > { %s1583_s25 = scalar_lea.hbm %s1644_s11, %s1043_s12  ;;  %s926_s21 = scalar_lea.sflag [#allocation4], %s1382_s22 }
 0x132   : > { %630 = vrot.lane.b32.xlu0 %v1430_v25, %s1214_s28  ;;  %588 = vrot.lane.b32.xlu1 %v1435_v27, %s1212_s19  ;;  %s939_s19 = sshll.u32 %s1567_s27, 4  ;;  %s1586_s19 = int_to_ptr.vmem [resolvable:$true] %s939_s19 }
 0x133   : > { %s1136_s16 = scalar_lea.vmem %s1586_s19, 1024 }
 0x134   : > { %p1137_p6 = scmp.ne.s32.totalorder %s1586_s19, %s1136_s16 }
 0x136   : > { %652 = vrot.lane.b32.xlu0 %v1430_v25, %s1215_s24  ;;  %610 = vrot.lane.b32.xlu1 %v1435_v27, %s1213_s26  ;;  %p1138_p12 = pnand %p1137_p6, %p1655_p11 }
 0x138   : > { %p1139_p13 = pneg %p1138_p12 }
 0x13a   : > { %740 = vperm.xlu0 %1102, %v737_v28   ;;  %632 = vrot.lane.b32.xlu1 %v1435_v27, %s1214_s28  ;;  %s1216_s28 = smov [#allocation5]  }
 0x13b   : > { %s1140_s14 = sshll.u32 %s1216_s28, 4  ;;  %s1141_s14 = int_to_ptr.vmem [resolvable:$false] %s1140_s14 }
 0x13c   : > { %p1143_p8 = scmp.lt.s32.totalorder %s1586_s19, %s1141_s14 }
 0x13e   : > { %843 = vperm.xlu0 %1102, %v837_v29   ;;  %654 = vrot.lane.b32.xlu1 %v1435_v27, %s1215_s24  ;;  %v599_v29 = vrot.slane %v1026_v19, %v1487_v44  ;;  %s1142_s24 = scalar_lea.vmem %s1141_s14, 2048 }
 0x13f   : > { %p1144_p10 = scmp.lt.s32.totalorder %s1142_s24, %s1136_s16 }
 0x141   : > { %p1145_p0 = por %p1144_p10, %p1143_p8 }
 0x142   : > { %853 = vperm.xlu0 %1102, %v839_v30   ;;  %748 = vperm.xlu1 %1103, %v745_v33   ;;  %v603_v30 = vrot.slane %v1026_v19, %v1493_v47 }
 0x143   : > { %p1146_p2 = pnand %p1145_p0, %p1139_p13 }
 0x146   : > { %875 = vperm.xlu0 %1102, %v869_v31   ;;  %848 = vperm.xlu1 %1103, %v838_v34  }
 0x14a   : > { %885 = vperm.xlu0 %1102, %v871_v32   ;;  %858 = vperm.xlu1 %1103, %v840_v35  }
 0x14e   : > { %880 = vperm.xlu1 %1103, %v870_v36  }
 0x152   : > { %890 = vperm.xlu1 %1103, %v872_v37  }
 0x190   : > { %v506_v40 = vpop.permute.xlu0 %505  ;;  %v483_v41 = vpop.permute.xlu1 %482 }
 0x194   : > { %v528_v46 = vpop.permute.xlu0 %527  ;;  %v485_v48 = vpop.permute.xlu1 %484 }
 0x195   : > { %v489_v53 = vsel %vm488_vm1, %v483_v41, %v485_v48  ;;  %v490_v54 = vsel %vm488_vm1, %v485_v48, %v483_v41  ;;  %v584_v48 = vmul.f32 %v577_v24, %v1430_v25 }
 0x196   : > { %v503_v59 = vmul.f32 %v496_v49, %v490_v54  ;;  %v504_v62 = vmul.f32 %v500_v51, %v489_v53  ;;  %v1028_v49 = vld [vmem:[%s1643_s10 + $0x7] ss:$8 sm:$0x3]  ;;  %v621_v53 = vrot.slane %v1027_v45, %v1487_v44 }
 0x197   : > { %v643_v25 = vrot.slane %v1028_v49, %v1487_v44 }
 0x198   : > { %v550_v55 = vpop.permute.xlu0 %549  ;;  %v508_v56 = vpop.permute.xlu1 %507 }
 0x199   : > { %v510_v57 = vsel %vm509_vm2, %v506_v40, %v508_v56  ;;  %v511_v58 = vsel %vm509_vm2, %v508_v56, %v506_v40  ;;  %v1029_v56 = vld [vmem:[%s1643_s10 + $0x10] ss:$8 sm:$0x3] }
 0x19a   : > { %v525_v60 = vmul.f32 %v518_v50, %v511_v58  ;;  %v526_v63 = vmul.f32 %v522_v52, %v510_v57 }
 0x19c   : > { %v530_v8 = vpop.permute.xlu1 %529  ;;  %v675_v9 = vpack.c.bf16 %v526_v63, %v504_v62  ;;  %v674_v12 = vpack.c.bf16 %v525_v60, %v503_v59  ;;  %v587_v15 = vpop.permute.xlu0 %586  ;;  %v665_v62 = vrot.slane %v1029_v56, %v1487_v44  ;;  %v669_v63 = vrot.slane %v1029_v56, %v1493_v47 }
 0x19d   : > { %v532_v20 = vsel %vm531_vm3, %v528_v46, %v530_v8  ;;  %v533_v21 = vsel %vm531_vm3, %v530_v8, %v528_v46  ;;  %v585_v46 = vmul.f32 %v581_v23, %v1435_v27  ;;  %v647_v27 = vrot.slane %v1028_v49, %v1493_v47 }
 0x19e   : > { %696 = vmatprep.subr.bf16.mxu1 %v675_v9  ;;  %v547_v31 = vmul.f32 %v540_v13, %v533_v21  ;;  %v548_v32 = vmul.f32 %v544_v16, %v532_v20 }
 0x19f   : > { %697 = vmatpush1.bf16.msra.mxu1 %v674_v12 }
 0x1a0   : > { %v552_v22 = vpop.permute.xlu1 %551  ;;  %v609_v35 = vpop.permute.xlu0 %608 }
 0x1a1   : > { %v554_v26 = vsel %vm553_vm4, %v550_v55, %v552_v22  ;;  %v555_v28 = vsel %vm553_vm4, %v552_v22, %v550_v55  ;;  %v625_v55 = vrot.slane %v1027_v45, %v1493_v47  ;;  %v684_v47 = vld [vmem:[%s1635_s2] sm:$0xf] }
 0x1a2   : > { %v569_v33 = vmul.f32 %v562_v17, %v555_v28  ;;  %v570_v34 = vmul.f32 %v566_v18, %v554_v26 }
 0x1a4   : > { %v589_v36 = vpop.permute.xlu1 %588  ;;  %v677_v37 = vpack.c.bf16 %v570_v34, %v548_v32  ;;  %v676_v38 = vpack.c.bf16 %v569_v33, %v547_v31  ;;  %v631_v54 = vpop.permute.xlu0 %630 }
 0x1a5   : > { %v591_v39 = vsel %vm590_vm5, %v587_v15, %v589_v36  ;;  %v592_v40 = vsel %vm590_vm5, %v589_v36, %v587_v15 }
 0x1a6   : > { %v606_v41 = vmul.f32 %v599_v29, %v591_v39  ;;  %v607_v43 = vmul.f32 %v603_v30, %v592_v40  ;;  %698 = vmatprep.subr.bf16.mxu1 %v677_v37  ;;  %v1104_v39 = vld [vmem:[%s1636_s3] sm:$0xff]   ;;  %v1105_v40 = vld [vmem:[%s1636_s3 + $0x8] sm:$0xff]  }
 0x1a7   : > { %699 = vmatpush1.bf16.msra.mxu1 %v676_v38 }
 0x1a8   : > { %v611_v50 = vpop.permute.xlu1 %610  ;;  %v679_v51 = vpack.c.bf16 %v607_v43, %v585_v46  ;;  %v678_v52 = vpack.c.bf16 %v606_v41, %v584_v48  ;;  %v653_v13 = vpop.permute.xlu0 %652 }
 0x1a9   : > { %v613_v57 = vsel %vm612_vm6, %v609_v35, %v611_v50  ;;  %v614_v58 = vsel %vm612_vm6, %v611_v50, %v609_v35 }
 0x1aa   : > { %700 = vmatprep.subr.bf16.mxu1 %v679_v51  ;;  %v628_v4 = vmul.f32 %v621_v53, %v613_v57  ;;  %v629_v8 = vmul.f32 %v625_v55, %v614_v58 }
 0x1ab   : > { %701 = vmatpush1.bf16.msra.mxu1 %v678_v52 }
 0x1ac   : > { %v633_v59 = vpop.permute.xlu1 %632 }
 0x1ad   : > { %v635_v60 = vsel %vm634_vm7, %v631_v54, %v633_v59  ;;  %v636_v61 = vsel %vm634_vm7, %v633_v59, %v631_v54 }
 0x1ae   : > { %v650_v9 = vmul.f32 %v643_v25, %v635_v60  ;;  %v651_v12 = vmul.f32 %v647_v27, %v636_v61 }
 0x1b0   : > { %v655_v14 = vpop.permute.xlu1 %654  ;;  %v681_v15 = vpack.c.bf16 %v651_v12, %v629_v8  ;;  %v680_v16 = vpack.c.bf16 %v650_v9, %v628_v4 }
 0x1b1   : > { %v657_v17 = vsel %vm656_vm8, %v653_v13, %v655_v14  ;;  %v658_v18 = vsel %vm656_vm8, %v655_v14, %v653_v13 }
 0x1b2   : > { %v672_v19 = vmul.f32 %v665_v62, %v657_v17  ;;  %v673_v20 = vmul.f32 %v669_v63, %v658_v18  ;;  %702 = vmatprep.subr.bf16.mxu1 %v681_v15 }
 0x1b3   : > { %703 = vmatpush1.bf16.msra.mxu1 %v680_v16 }
 0x1b4   : > { %v682_v42 = vpack.c.bf16 %v672_v19, %v672_v19  ;;  %v683_v21 = vpack.c.bf16 %v673_v20, %v673_v20 }
 0x1b6   : > { %1030 = vmatprep.subr.msk.bf16.mxu1 %vm689_vm9, %v683_v21  ;;  %v691_v44 = vsel %vm689_vm9, %v682_v42, 0 }
 0x1b7   : > { %705 = vmatpush1.bf16.msra.mxu1 %v691_v44 }
 0x1b9   : > { %v741_v22 = vpop.permute.xlu0 %740 }
 0x1ba   : > { %1031 = vmatmul.mubr.msk.bf16.vlgmr.msra.gmra.mrb[0].mxu1 %vm685_vm10, %v684_v47 }
 0x1bd   : > { %v844_v41 = vpop.permute.xlu0 %843 }
 0x1c1   : > { %v749_v28 = vpop.permute.xlu1 %748  ;;  %v854_v45 = vpop.permute.xlu0 %853 }
 0x1c5   : > { %v849_v43 = vpop.permute.xlu1 %848  ;;  %v876_v51 = vpop.permute.xlu0 %875 }
 0x1c9   : > { %v859_v46 = vpop.permute.xlu1 %858 }
 0x28d   : > { %v730_v23 = vpop.f32.mrb[0].mxu1 }
 0x28e   : > { %v743_v24 = vmul.f32 %v741_v22, %v730_v23  ;;  %v732_v26 = vpop.f32.mrb[1].mxu1 }
 0x28f   : > { %v744_v29 = vmul.f32 %v741_v22, %v732_v26  ;;  %v734_v30 = vpop.f32.mrb[2].mxu1 }
 0x290   : > { %v751_v31 = vadd.f32 %v749_v28, %v743_v24  ;;  %v735_v32 = vpop.f32.mrb[3].mxu1 }
 0x291   : > { %v752_v33 = vadd.f32 %v749_v28, %v744_v29 }
 0x292   : > { %v753_v34 = vmax.f32 %v751_v31, 0.0 }
 0x293   : > { %v754_v35 = vmax.f32 %v752_v33, 0.0 }
 0x294   : > { %v759_v36 = vpack.c.bf16 %v753_v34, %v753_v34 }
 0x295   : > { %v760_v37 = vpack.c.bf16 %v754_v35, %v754_v35 }
 0x296   : > { %v779_v38 = vsel %vm689_vm9, %v759_v36, 0 }
 0x297   : > { %1034 = vmatprep.subr.msk.bf16.mxu0 %vm689_vm9, %v760_v37 }
 0x298   : > { %785 = vmatpush1.bf16.msra.mxu0 %v779_v38 }
 0x29b   : > { %1035 = vmatmul.mubr.msk.bf16.vlgmr.msra.gmra.mrb[4].mxu0 %vm771_vm11, %v1104_v39 }
 0x29c   : > { %826 = vmatprep.mubr.bf16.mxu0 %v1207_v0  ;;  %v881_v0 = vpop.permute.xlu1 %880 }
 0x2a0   : > { %v891_v17 = vpop.permute.xlu1 %890 }
 0x2a3   : > { %1036 = vmatmul.mubr.msk.bf16.gmra.mrb[8].mxu0 %vm771_vm11, %v1105_v40 }
 0x36e   : > { %v818_v48 = vpop.f32.mrb[4].mxu0 }
 0x36f   : > { %v861_v49 = vmul.f32 %v844_v41, %v818_v48  ;;  %v820_v50 = vpop.f32.mrb[5].mxu0 }
 0x370   : > { %v862_v52 = vmul.f32 %v844_v41, %v820_v50  ;;  %v822_v53 = vpop.f32.mrb[6].mxu0 }
 0x371   : > { %v893_v54 = vadd.f32 %v876_v51, %v861_v49  ;;  %v863_v55 = vmul.f32 %v849_v43, %v822_v53  ;;  %v824_v25 = vpop.f32.mrb[7].mxu0 }
 0x372   : > { %v894_v27 = vadd.f32 %v876_v51, %v862_v52  ;;  %v864_v56 = vmul.f32 %v849_v43, %v824_v25 }
 0x373   : > { %v901_v57 = vadd.f32 %v893_v54, %v1400_v3  ;;  %v895_v58 = vadd.f32 %v881_v0, %v863_v55 }
 0x374   : > { %v902_v59 = vadd.f32 %v894_v27, %v1396_v1  ;;  %v896_v60 = vadd.f32 %v881_v0, %v864_v56  ;;  %v886_v1 = vpop.permute.xlu0 %885 }
 0x375   : > { %v909_v61 = vmax.f32 %v901_v57, 0.0  ;;  %v903_v62 = vadd.f32 %v895_v58, %v1404_v5 }
 0x376   : > { %v910_v63 = vmax.f32 %v902_v59, 0.0  ;;  %v904_v4 = vadd.f32 %v896_v60, %v1398_v2  ;;  %v828_v8 = vpop.f32.mrb[8].mxu0 }
 0x377   : > { %917 = vst [vmem:[%s1567_s27] sm:$0xff] %v909_v61  ;;  %v911_v3 = vmax.f32 %v903_v62, 0.0  ;;  %v865_v9 = vmul.f32 %v854_v45, %v828_v8  ;;  %v830_v12 = vpop.f32.mrb[9].mxu0 }
 0x378   : > { %918 = vst [vmem:[%s1567_s27 + $0x8] sm:$0xff] %v910_v63  ;;  %v912_v13 = vmax.f32 %v904_v4, 0.0  ;;  %v866_v5 = vmul.f32 %v854_v45, %v830_v12  ;;  %v832_v14 = vpop.f32.mrb[10].mxu0 }
 0x379   : > { %919 = vst [vmem:[%s1567_s27 + $0x10] sm:$0xff] %v911_v3  ;;  %v897_v2 = vadd.f32 %v886_v1, %v865_v9  ;;  %v867_v15 = vmul.f32 %v859_v46, %v832_v14  ;;  %v834_v16 = vpop.f32.mrb[11].mxu0 }
 0x37a   : > { %920 = vst [vmem:[%s1567_s27 + $0x18] sm:$0xff] %v912_v13  ;;  %v898_v18 = vadd.f32 %v886_v1, %v866_v5  ;;  %v868_v19 = vmul.f32 %v859_v46, %v834_v16 }
 0x37b   : > { %v905_v20 = vadd.f32 %v897_v2, %v1414_v10  ;;  %v899_v42 = vadd.f32 %v891_v17, %v867_v15 }
 0x37c   : > { %v906_v21 = vadd.f32 %v898_v18, %v1406_v6  ;;  %v900_v44 = vadd.f32 %v891_v17, %v868_v19 }
 0x37d   : > { %v913_v47 = vmax.f32 %v905_v20, 0.0  ;;  %v907_v22 = vadd.f32 %v899_v42, %v1416_v11 }
 0x37e   : > { %v914_v23 = vmax.f32 %v906_v21, 0.0  ;;  %v908_v24 = vadd.f32 %v900_v44, %v1408_v7 }
 0x37f   : > { %921 = vst [vmem:[%s1567_s27 + $0x20] sm:$0xff] %v913_v47  ;;  %v915_v26 = vmax.f32 %v907_v22, 0.0 }
 0x380   : > { %922 = vst [vmem:[%s1567_s27 + $0x28] sm:$0xff] %v914_v23  ;;  %v916_v6 = vmax.f32 %v908_v24, 0.0 }
 0x381   : > { %923 = vst [vmem:[%s1567_s27 + $0x30] sm:$0xff] %v915_v26 }
 0x382   : > { %924 = vst [vmem:[%s1567_s27 + $0x38] sm:$0xff] %v916_v6 }
 0x383   : > { %1149 = shalt.err (!%p1146_p2)
}
 0x384   : > { %s1150_s13 = scalar_lea.hbm %s1583_s25, 1024  ;;  %s1154_s15 = scalar_lea.hbm %s1644_s11, 2048 }
 0x385   : > { %p1151_p4 = scmp.ne.s32.totalorder %s1583_s25, %s1150_s13  ;;  %p1155_p9 = scmp.lt.u32.totalorder %s1583_s25, %s1644_s11 }
 0x386   : > { %p1156_p1 = scmp.lt.u32.totalorder %s1154_s15, %s1150_s13  ;;  %p1158_p6 = scmp.lt.u32.totalorder %s1150_s13, %s1583_s25 }
 0x387   : > { %p1152_p5 = pnand %p1151_p4, %p1655_p11 }
 0x388   : > { %p1157_p3 = por %p1156_p1, %p1155_p9 }
 0x389   : > { %p1153_p7 = pneg %p1152_p5 }
 0x38a   : > { %p1159_p12 = por %p1158_p6, %p1157_p3 }
 0x38c   : > { %p1160_p13 = pnand %p1159_p12, %p1153_p7 }
 0x38e   : > { %1163 = shalt.err (!%p1160_p13)
}
 0x38f   : > { %s1217_s16 = smov 256   ;;  %s1656_s14 = smov 16  }
 0x390   : > { %1046 = dma.vmem_to_hbm [thread:$0]  (%p1655_p11), %s1586_s19, 1024, %s1583_s25, %s926_s21, %s1217_s16, %s1217_s16, %s1656_s14  }
 0x391 PF: > { %s954_s24 = sand.u32 1, %s1190_s17   ;;  %p1657_p8 = scmp.ne.s32.totalorder %s1653_s30, 0 }
 0x392   : > { %p1658_p10 = scmp.ge.s32.totalorder %s1202_s20, 2  ;;  %s955_s13 = scalar_lea.sflag [#allocation4], %s954_s24 }
 0x394   : > { %p1053_p0 = pnand %p1658_p10, %p1657_p8 }
 0x396   : > { %1185 = dma.done.wait (!%p1053_p0), %s955_s13, 1024  }
 0x397   : > { %1187 = vsyncadd (!%p1053_p0), %s955_s13, 4294966272  ;;  %s1659_s29 = sld [smem:[#allocation8_spill]]  ;;  %s1660_s19 = sld [smem:[#allocation9_spill]] }
 0x398   : > { %p24_p2 = scmp.ge.s32.totalorder %s1303_s23, 4   ;;  %s1661_s17 = smov %s1194_s18 }
 0x399   : > { %s1663_s20 = smov %s1303_s23 }
 0x39a   :  { %26 = sbr.rel (!%p24_p2) target bundleno = 5 (0x5), region = 117 }
 0x39d   : > { %s1662_s18 = smov %s1659_s29 }
 0x3a1   :  { %960 = vsyncpa [#allocation3], 1 }
 0x3a2   :  { %962 = vsyncpa [#allocation3 + $0x1], 1 }
 0x3a3   :  { %963 = vsyncpa [#allocation4], 1 }
 0x3a4   :  { %965 = vsyncpa [#allocation4 + $0x1], 1 }

</bundles_post_ra>
